<compile_context>
chip_gen: v6e
topology: v6e:2x2x1
jax: 0.10.0
libtpu: 0.0.40
codegen_flags: <defaults>
</compile_context>

<pallas_src>
import jax
import jax.numpy as jnp
from jax import lax
from jax.experimental import pallas as pl
from jax.experimental.pallas import tpu as pltpu


def _vq_argmin_kernel(x_ref, e_ref, e2_ref, idx_ref):
    # x_ref  : (TILE_N, D)  f32 input rows for this grid step
    # e_ref  : (K_pad, D)   f32 codebook, VMEM-resident across the grid
    # e2_ref : (K_pad, 1)   f32 hoisted 0.5*||e||^2 (padded rows = 1e30)
    # idx_ref: (1, 1, TILE_N) i32 nearest-code index per row (lane-dense)
    x = x_ref[...]
    e = e_ref[...]

    # score[k, n] = 0.5*||e_k||^2 - <e_k, x_n>;  argmin_k score == argmin_k dist
    score = e2_ref[...] - lax.dot_general(
        e, x,
        dimension_numbers=(((1,), (1,)), ((), ())),   # contract D (q @ k.T style)
        preferred_element_type=jnp.float32,
    )                                                 # (K_pad, TILE_N)

    kp, tn = score.shape

    # argmin along K (sublane axis) with first-index tie-breaking (== torch).
    # TODO(synk): collapse to a single jnp.argmin once Mosaic argmin lowering is
    # verified on all target generations; this two-reduce form is known-good.
    min_s = jnp.min(score, axis=0, keepdims=True)                     # (1, TN)
    row = lax.broadcasted_iota(jnp.int32, (kp, 1), 0)                 # (Kp, 1)
    idx = jnp.min(jnp.where(score == min_s, row, jnp.int32(kp)),
                  axis=0, keepdims=True)                              # (1, TN)

    idx_ref[...] = idx.reshape(1, 1, tn)


def vq_nearest_indices_pallas(flat_input, embedding, *, tile_n=None):
    """flat_input: (N, D) f32, embedding: (K, D) f32 -> indices (N,) int32."""
    flat_input = flat_input.astype(jnp.float32)
    embedding = embedding.astype(jnp.float32)
    n, d = flat_input.shape
    k, d2 = embedding.shape
    assert d == d2

    # ---- lane-dense codebook: pad K up to a multiple of 128 -----------------
    # (kept at 128 multiples on all generations: the MXU output width here is
    #  TILE_N, not K_pad, so growing K_pad only inflates (K_pad, TN) VPU work)
    k_pad = max(128, pl.cdiv(k, 128) * 128)
    e_pad = jnp.zeros((k_pad, d), jnp.float32).at[:k, :].set(embedding)
    half_e2 = 0.5 * jnp.sum(embedding * embedding, axis=1)
    # padded codes get a huge score so they can never win the argmin
    e2_col = jnp.full((k_pad, 1), 1e30, jnp.float32).at[:k, 0].set(half_e2)

    # ---- chip-aware tiling over N (v7x has 64 MiB VMEM vs 128 on v5e/v6e) ---
    d_lanes = max(128, pl.cdiv(d, 128) * 128)        # lane-padded width of x / e
    try:
        vmem_cap = int(pltpu.get_tpu_info().vmem_capacity_bytes)
    except Exception:
        vmem_cap = 64 * 1024 * 1024                  # conservative (v7x per-core)

    resident = 4 * 2 * (k_pad * d_lanes + k_pad * 128)   # e + 0.5||e||^2, dbl-buf
    per_row = 4 * (2 * d_lanes          # x tile, double-buffered, lane-padded
                   + 2 * 8              # idx out (sublane-padded), double-buffered
                   + 4 * k_pad)         # score + compare/where temporaries
    budget = vmem_cap // 2              # headroom for pipelining / regalloc
    if tile_n is None:
        tile_n = max(128, (budget - resident) // max(per_row, 1))
        tile_n = min(tile_n, 2048)
    tile_n = int(min(tile_n, pl.cdiv(n, 128) * 128))
    tile_n = max(128, (tile_n // 128) * 128)

    num_tiles = pl.cdiv(n, tile_n)
    n_pad = num_tiles * tile_n
    if n_pad != n:
        flat_input = jnp.pad(flat_input, ((0, n_pad - n), (0, 0)))

    est_vmem = resident + per_row * tile_n
    vmem_limit = int(min(max(2 * est_vmem, 32 * 1024 * 1024),
                         (vmem_cap * 9) // 10))

    flops = 2 * n_pad * k_pad * d + 5 * n_pad * k_pad
    bytes_accessed = 4 * (n_pad * d + k_pad * d + k_pad + n_pad)

    grid_spec = pltpu.PrefetchScalarGridSpec(
        num_scalar_prefetch=0,
        grid=(num_tiles,),
        in_specs=[
            pl.BlockSpec((tile_n, d), lambda i: (i, 0)),    # x tile
            pl.BlockSpec((k_pad, d), lambda i: (0, 0)),     # codebook (resident)
            pl.BlockSpec((k_pad, 1), lambda i: (0, 0)),     # 0.5*||e||^2 (resident)
        ],
        # lane-dense index writeback: (num_tiles, 1, TILE_N) with full-128 lanes
        out_specs=pl.BlockSpec((1, 1, tile_n), lambda i: (i, 0, 0)),
    )

    idx = pl.pallas_call(
        _vq_argmin_kernel,
        out_shape=jax.ShapeDtypeStruct((num_tiles, 1, tile_n), jnp.int32),
        grid_spec=grid_spec,
        compiler_params=pltpu.CompilerParams(
            # TODO(synk): on v7x confirm both TensorCores are busy; switch the N
            # axis to pltpu.CORE_PARALLEL if the profile shows only one TC.
            dimension_semantics=("parallel",),
            vmem_limit_bytes=vmem_limit,
        ),
        cost_estimate=pl.CostEstimate(
            flops=flops, transcendentals=0, bytes_accessed=bytes_accessed),
    )(flat_input, e_pad, e2_col)

    return idx.reshape(-1)[:n]


def vector_quantizer_ema_forward(x_nchw, embedding, commitment_cost, *,
                                 tile_n=None):
    """Mirrors VectorQuantizerEMA.forward (eval mode).

    x_nchw: (B, C, H, W) with C == embedding_dim
    embedding: (num_embeddings, embedding_dim)
    Returns (loss, quantized_nchw, perplexity, encodings, encoding_indices).
    """
    B, C, H, W = x_nchw.shape
    K, D = embedding.shape
    assert C == D, "channel dim must equal embedding_dim"
    embedding = embedding.astype(jnp.float32)

    # NCHW -> NHWC, flatten to (N, D)
    inputs_nhwc = jnp.transpose(x_nchw, (0, 2, 3, 1)).astype(jnp.float32)
    flat_input = inputs_nhwc.reshape(-1, D)
    N = flat_input.shape[0]

    idx = vq_nearest_indices_pallas(flat_input, embedding, tile_n=tile_n)  # (N,)
    encoding_indices = idx[:, None]                                        # (N, 1)

    # Bit-exact codebook-row gather (== torch's one-hot matmul for f32), and the
    # dense one-hot the module's return contract requires anyway.
    quantized_flat = jnp.take(embedding, idx, axis=0)                      # (N, D)
    encodings = jax.nn.one_hot(idx, K, dtype=jnp.float32)                  # (N, K)

    quantized = quantized_flat.reshape(B, H, W, D)

    # commitment loss (quantized detached in torch; values identical)
    e_latent_loss = jnp.mean((lax.stop_gradient(quantized) - inputs_nhwc) ** 2)
    loss = commitment_cost * e_latent_loss

    # straight-through estimator
    quantized_st = inputs_nhwc + lax.stop_gradient(quantized - inputs_nhwc)

    # perplexity from the returned dense one-hot, exactly like the torch module
    avg_probs = jnp.mean(encodings, axis=0)
    perplexity = jnp.exp(-jnp.sum(avg_probs * jnp.log(avg_probs + 1e-10)))

    quantized_nchw = jnp.transpose(quantized_st, (0, 3, 1, 2))
    return loss, quantized_nchw, perplexity, encodings, encoding_indices


if __name__ == "__main__":
    num_embeddings = 16
    embedding_dim = 4
    commitment_cost = 0.25

    key = jax.random.PRNGKey(0)
    k_emb, k_x = jax.random.split(key)

    # deterministic "normal_()" init of the codebook
    embedding = jax.random.normal(
        k_emb, (num_embeddings, embedding_dim), dtype=jnp.float32)

    # NCHW input, C == embedding_dim   -> N = 2*16*16 = 512 rows
    x = jax.random.normal(k_x, (2, embedding_dim, 16, 16), dtype=jnp.float32)

    # tile_n=128 -> grid=(4,) so the tiled path is exercised even at demo size
    loss, quantized, perplexity, encodings, indices = (
        vector_quantizer_ema_forward(x, embedding, commitment_cost, tile_n=128))

    jax.block_until_ready((loss, quantized, perplexity, encodings, indices))

    # light sanity checks against a pure-JAX reference (tolerance-based)
    inputs = jnp.transpose(x, (0, 2, 3, 1)).reshape(-1, embedding_dim)
    d_ref = (jnp.sum(inputs ** 2, axis=1, keepdims=True)
             + jnp.sum(embedding ** 2, axis=1)
             - 2.0 * inputs @ embedding.T)
    chosen_d = jnp.take_along_axis(d_ref, indices, axis=1)[:, 0]
    assert bool(jnp.all(chosen_d <= jnp.min(d_ref, axis=1) + 1e-4))

    q_gather = embedding[indices[:, 0]].reshape(2, 16, 16, embedding_dim)
    in_nhwc = inputs.reshape(2, 16, 16, embedding_dim)
    q_st_ref = jnp.transpose(in_nhwc + (q_gather - in_nhwc), (0, 3, 1, 2))
    assert jnp.allclose(quantized, q_st_ref, atol=1e-6)

    # encodings/indices consistency
    assert bool(jnp.all(jnp.argmax(encodings, axis=1) == indices[:, 0]))
    assert bool(jnp.all(jnp.sum(encodings, axis=1) == 1.0))

    assert quantized.shape == x.shape
    assert encodings.shape == (2 * 16 * 16, num_embeddings)
    assert indices.shape == (2 * 16 * 16, 1)
    assert bool(jnp.isfinite(loss)) and bool(jnp.isfinite(perplexity))
    print("KERNEL_OK")
</pallas_src>

<mosaic_0001>
module attributes {stable_mosaic.version = 11 : i64} {
  func.func @_vq_argmin_kernel(%arg0: i32, %arg1: memref<128x4xf32, #tpu.memory_space<vmem>>, %arg2: memref<128x4xf32, #tpu.memory_space<vmem>>, %arg3: memref<128x1xf32, #tpu.memory_space<vmem>>, %arg4: memref<1x1x128xi32, #tpu.memory_space<vmem>>) attributes {dimension_semantics = [#tpu.dimension_semantics<parallel>], iteration_bounds = array<i64: 4>, scalar_prefetch = 0 : i64, scratch_operands = 0 : i64, tpu.core_type = #tpu.core_type<tc>, window_params = [{transform_indices = @transform_0, window_bounds = array<i64: 128, 4>}, {pipeline_mode = #tpu.pipeline_mode<synchronous>, transform_indices = @transform_1, window_bounds = array<i64: 128, 4>}, {pipeline_mode = #tpu.pipeline_mode<synchronous>, transform_indices = @transform_2, window_bounds = array<i64: 128, 1>}, {transform_indices = @transform_3, window_bounds = array<i64: 1, 1, 128>}]} {
    %c0 = arith.constant 0 : index
    %c0_0 = arith.constant 0 : index
    %0 = vector.load %arg1[%c0, %c0_0] : memref<128x4xf32, #tpu.memory_space<vmem>>, vector<128x4xf32>
    %c0_1 = arith.constant 0 : index
    %c0_2 = arith.constant 0 : index
    %1 = vector.load %arg2[%c0_1, %c0_2] : memref<128x4xf32, #tpu.memory_space<vmem>>, vector<128x4xf32>
    %c0_3 = arith.constant 0 : index
    %c0_4 = arith.constant 0 : index
    %2 = vector.load %arg3[%c0_3, %c0_4] : memref<128x1xf32, #tpu.memory_space<vmem>>, vector<128x1xf32>
    %cst = arith.constant dense<0.000000e+00> : vector<128x128xf32>
    %3 = tpu.matmul %1, %0, %cst {dimension_numbers = #tpu.dot_dimension_numbers<[1], [1], [0], [0], [0, 0, 1, 0], [], []>} : vector<128x4xf32>, vector<128x4xf32>, vector<128x128xf32> -> vector<128x128xf32>
    %4 = vector.broadcast %2 : vector<128x1xf32> to vector<128x128xf32>
    %5 = arith.subf %4, %3 : vector<128x128xf32>
    %cst_5 = arith.constant dense<0x7F800000> : vector<128xf32>
    %6 = vector.multi_reduction <minimumf>, %5, %cst_5 [0] : vector<128x128xf32> to vector<128xf32>
    %7 = vector.shape_cast %6 : vector<128xf32> to vector<1x128xf32>
    %8 = tpu.iota {dimensions = array<i32: 0>} : vector<128x1xi32>
    %9 = vector.broadcast %7 : vector<1x128xf32> to vector<128x128xf32>
    %10 = arith.cmpf oeq, %5, %9 : vector<128x128xf32>
    %c128_i32 = arith.constant 128 : i32
    %11 = vector.shape_cast %8 : vector<128x1xi32> to vector<128x1xi32>
    %12 = vector.broadcast %11 : vector<128x1xi32> to vector<128x128xi32>
    %13 = vector.broadcast %c128_i32 : i32 to vector<128x128xi32>
    %14 = arith.select %10, %12, %13 : vector<128x128xi1>, vector<128x128xi32>
    %cst_6 = arith.constant dense<2147483647> : vector<128xi32>
    %15 = vector.multi_reduction <minsi>, %14, %cst_6 [0] : vector<128x128xi32> to vector<128xi32>
    %16 = vector.shape_cast %15 : vector<128xi32> to vector<1x128xi32>
    %17 = vector.shape_cast %16 : vector<1x128xi32> to vector<1x1x128xi32>
    %c0_7 = arith.constant 0 : index
    %c0_8 = arith.constant 0 : index
    %c0_9 = arith.constant 0 : index
    %18 = vector.load %arg4[%c0_7, %c0_8, %c0_9] : memref<1x1x128xi32, #tpu.memory_space<vmem>>, vector<1x1x128xi32>
    tpu.vector_store %arg4[%c0_7, %c0_8, %c0_9], %17 {strides = array<i32>} : memref<1x1x128xi32, #tpu.memory_space<vmem>>, vector<1x1x128xi32>,
    return
  }
  func.func @transform_0(%arg0: i32) -> (i32, i32) {
    %c0_i32 = arith.constant 0 : i32
    %c0_i32_0 = arith.constant 0 : i32
    return %arg0, %c0_i32 : i32, i32
  }
  func.func @transform_1(%arg0: i32) -> (i32, i32) {
    %c0_i32 = arith.constant 0 : i32
    %c0_i32_0 = arith.constant 0 : i32
    %c0_i32_1 = arith.constant 0 : i32
    return %c0_i32, %c0_i32_0 : i32, i32
  }
  func.func @transform_2(%arg0: i32) -> (i32, i32) {
    %c0_i32 = arith.constant 0 : i32
    %c0_i32_0 = arith.constant 0 : i32
    %c0_i32_1 = arith.constant 0 : i32
    return %c0_i32, %c0_i32_0 : i32, i32
  }
  func.func @transform_3(%arg0: i32) -> (i32, i32, i32) {
    %c0_i32 = arith.constant 0 : i32
    %c0_i32_0 = arith.constant 0 : i32
    %c0_i32_1 = arith.constant 0 : i32
    return %arg0, %c0_i32, %c0_i32_0 : i32, i32, i32
  }
}

</mosaic_0001>

<bundles_post_ra>
// kernel: tpu_custom_call.1
= control target key start
LH: loop header
LB: loop body
LE: loop exit
PB: predicated region body
PF: predicated region fallthrough
CT: control target
= control target key end

     0   :  { %8 = vsyncpa [#allocation3], 0  ;;  %s1398_s0 = inlined_call_operand.vmem [shape: f32[512,4], index: 0, kind: input, shape index: {}]   ;;  %s1399_s1 = inlined_call_operand.vmem [shape: f32[128,4], index: 1, kind: input, shape index: {}]   ;;  %s1400_s2 = inlined_call_operand.vmem [shape: f32[128,1], index: 2, kind: input, shape index: {}]   ;;  %s1401_s3 = inlined_call_operand.hbm [shape: s32[4,1,128], index: 3, kind: output, shape index: {}]  }
   0x1   :  { %10 = vsyncpa [#allocation3 + $0x1], 0  ;;  %s1021_s12 = smov 0   ;;  %s1023_s13 = smov 0  }
   0x2   :  { %s1025_s14 = smov 0   ;;  %s1027_s15 = smov 0  }
   0x3 LB: > { %s733_s16 = sadd.s32 4294967295, %s997_s15   ;;  %s734_s17 = sadd.s32 4294967294, %s997_s15   ;;  %s997_s15 = sphi %s1027_s15, %s1407_s15   ;;  %s993_s14 = sphi %s1025_s14, %s1406_s14   ;;  %s989_s13 = sphi %s1023_s13, %s1405_s13   ;;  %s985_s12 = sphi %s1021_s12, %s1404_s12  }
   0x4   : > { %s1044_s18 = sadd.s32 1, %s997_s15   ;;  %s91_s19 = sadd.s32 1, %s993_s14 }
   0x5   : > { %s88_s20 = ssub.s32 %s997_s15, %s1044_s18  ;;  %p101_p0 = scmp.ne.s32.totalorder %s993_s14, %s989_s13 }
   0x6   : > { %p89_p1 = scmp.eq.s32.totalorder %s88_s20, 0  ;;  %p102_p2 = scmp.eq.s32.totalorder %s733_s16, 3 }
   0x7   : > { %p107_p3 = scmp.ne.s32.totalorder %s989_s13, %s985_s12  ;;  %p108_p4 = scmp.eq.s32.totalorder %s734_s17, 3 }
   0x8   : > { %s1054_s21 = scalar_select %p89_p1, %s993_s14, %s91_s19  }
   0x9   : > { %p1056_p5 = por %p102_p2, %p101_p0  ;;  %p1060_p6 = por %p108_p4, %p107_p3 }
   0xa   : > { %p737_p7 = scmp.ge.s32.totalorder %s997_s15, 1  ;;  %p141_p8 = scmp.lt.s32.totalorder %s997_s15, 5 }
   0xc   : > { %p142_p9 = pnand %p737_p7, %p141_p8 }
   0xd   : > { %s1066_s24 = sshll.u32 (!%p142_p9), %s733_s16, 4  ;;  %s162_s19 = sand.u32 (!%p142_p9), 1, %s989_s13  }
   0xe   : > { %145 = sbr.rel (%p142_p9) target bundleno = 362 (0x16a), region = 32  ;;  %p165_p10 = scmp.lt.s32.totalorder (!%p142_p9), %s1066_s24, 63 }
   0xf   : > { %s163_s20 = scalar_lea.vmem (!%p142_p9), [#allocation2], %s162_s19  ;;  %s1363_s28 = scalar_lea.hbm (!%p142_p9), %s1401_s3, %s1066_s24 }
  0x10   : > { %s679_s25 = sshll.u32 (!%p142_p9), %s163_s20, 4  ;;  %s1000_s4 = smov (!%p142_p9), [#allocation2]   ;;  %s680_s25 = int_to_ptr.vmem [resolvable:$true] %s679_s25 }
  0x11   : > { %s941_s5 = sshll.u32 (!%p142_p9), %s1000_s4, 4  ;;  %s942_s5 = int_to_ptr.vmem [resolvable:$false] %s941_s5 }
  0x12   : > { %s943_s6 = scalar_lea.vmem (!%p142_p9), %s942_s5, 32  ;;  %p944_p0 = scmp.lt.s32.totalorder (!%p142_p9), %s680_s25, %s942_s5 }
  0x13   : > { %vm218_vm0 = vcmask 31744   ;;  %v186_v0 = vld [vmem:[%s1399_s1] sm:$0xff]  ;;  %v999_v2 = vmov 0   ;;  %s166_s29 = scalar_select %p165_p10, %s1066_s24, 63  ;;  %v204_v3 = vld [vmem:[%s1400_s2 + $0x10] sm:$0xff]  ;;  %v205_v7 = vld [vmem:[%s1400_s2 + $0x18] sm:$0xff] }
  0x14   : > { %v194_v1 = vld [vmem:[%s1399_s1 + $0x40] sm:$0xff]  ;;  %839 = vmatprep.mubr.msk.f32.mxu0 %vm218_vm0, %v186_v0  ;;  %936 = vset.pattern.permute.xlu1 %v999_v2  ;;  %v203_v8 = vld [vmem:[%s1400_s2 + $0x8] sm:$0xff]  ;;  %v209_v13 = vld [vmem:[%s1400_s2 + $0x38] sm:$0xff] }
  0x15   : > { %851 = vmatprep.mubr.msk.f32.mxu1 %vm218_vm0, %v194_v1  ;;  %935 = vset.pattern.permute.xlu0 %v999_v2  ;;  %s739_s30 = sshll.u32 %s166_s29, 3  ;;  %v202_v4 = vld [vmem:[%s1400_s2] sm:$0xff]  ;;  %v207_v10 = vld [vmem:[%s1400_s2 + $0x28] sm:$0xff]  ;;  %v208_v14 = vld [vmem:[%s1400_s2 + $0x30] sm:$0xff]  ;;  %s667_s29 = scalar_lea.sflag [#allocation3], %s162_s19 }
  0x16   : > { %s1087_s10 = scalar_lea.vmem %s1398_s0, %s739_s30  ;;  %472 = vperm.xlu1 %936, %v204_v3   ;;  %462 = vperm.xlu0 %935, %v202_v4   ;;  %v206_v11 = vld [vmem:[%s1400_s2 + $0x20] sm:$0xff]  ;;  %v211_v16 = vld [vmem:[%s1400_s2 + $0x48] sm:$0xff]  ;;  %v213_v19 = vld [vmem:[%s1400_s2 + $0x58] sm:$0xff]  ;;  %s937_s30 = scalar_lea.vmem %s680_s25, 16 }
  0x17   : > { %v185_v5 = vld [vmem:[%s1087_s10 + $0x78] sm:$0xff]  ;;  %v184_v6 = vld [vmem:[%s1087_s10 + $0x70] sm:$0xff]  ;;  %v183_v9 = vld [vmem:[%s1087_s10 + $0x68] sm:$0xff]  ;;  %p938_p11 = scmp.ne.s32.totalorder %s680_s25, %s937_s30  ;;  %p945_p1 = scmp.lt.s32.totalorder %s943_s6, %s937_s30 }
  0x18   : > { %807 = vmatprep.subr.msk.mxu0 %vm218_vm0, %v185_v5  ;;  %863 = vmatprep.subr.msk.mxu1 %vm218_vm0, %v185_v5  ;;  %v182_v12 = vld [vmem:[%s1087_s10 + $0x60] sm:$0xff]  ;;  %v181_v15 = vld [vmem:[%s1087_s10 + $0x58] sm:$0xff]  ;;  %v180_v18 = vld [vmem:[%s1087_s10 + $0x50] sm:$0xff] }
  0x19   : > { %808 = vmatpush3.xpose.msk.msra.mxu0 %vm218_vm0, %v185_v5  ;;  %879 = vmatpush3.xpose.msk.msra.mxu1 %vm218_vm0, %v185_v5  ;;  %v210_v17 = vld [vmem:[%s1400_s2 + $0x40] sm:$0xff]  ;;  %v212_v20 = vld [vmem:[%s1400_s2 + $0x50] sm:$0xff]  ;;  %v179_v21 = vld [vmem:[%s1087_s10 + $0x48] sm:$0xff]  ;;  %p939_p12 = pnand %p938_p11, %p1056_p5  ;;  %p946_p2 = por %p945_p1, %p944_p0 }
  0x1a   : > { %809 = vmatprep.subr.msk.mxu0 %vm218_vm0, %v184_v6  ;;  %864 = vmatprep.subr.msk.mxu1 %vm218_vm0, %v184_v6  ;;  %v215_v22 = vld [vmem:[%s1400_s2 + $0x68] sm:$0xff]  ;;  %v214_v23 = vld [vmem:[%s1400_s2 + $0x60] sm:$0xff]  ;;  %v217_v25 = vld [vmem:[%s1400_s2 + $0x78] sm:$0xff] }
  0x1b   : > { %477 = vperm.xlu1 %936, %v205_v7   ;;  %467 = vperm.xlu0 %935, %v203_v8   ;;  %v178_v24 = vld [vmem:[%s1087_s10 + $0x40] sm:$0xff]  ;;  %v216_v26 = vld [vmem:[%s1400_s2 + $0x70] sm:$0xff]  ;;  %v177_v27 = vld [vmem:[%s1087_s10 + $0x38] sm:$0xff]  ;;  %p940_p13 = pneg %p939_p12 }
  0x1c   : > { %v176_v28 = vld [vmem:[%s1087_s10 + $0x30] sm:$0xff]  ;;  %v175_v29 = vld [vmem:[%s1087_s10 + $0x28] sm:$0xff]  ;;  %v174_v30 = vld [vmem:[%s1087_s10 + $0x20] sm:$0xff] }
  0x1d   : > { %810 = vmatpush3.xpose.msk.msra.mxu0 %vm218_vm0, %v184_v6  ;;  %880 = vmatpush3.xpose.msk.msra.mxu1 %vm218_vm0, %v184_v6  ;;  %v173_v31 = vld [vmem:[%s1087_s10 + $0x18] sm:$0xff]  ;;  %v172_v32 = vld [vmem:[%s1087_s10 + $0x10] sm:$0xff]  ;;  %v171_v33 = vld [vmem:[%s1087_s10 + $0x8] sm:$0xff]  ;;  %p947_p3 = pnand %p946_p2, %p940_p13 }
  0x1e   : > { %811 = vmatprep.subr.msk.mxu0 %vm218_vm0, %v183_v9  ;;  %865 = vmatprep.subr.msk.mxu1 %vm218_vm0, %v183_v9  ;;  %v170_v34 = vld [vmem:[%s1087_s10] sm:$0xff]  ;;  %v187_v35 = vld [vmem:[%s1399_s1 + $0x8] sm:$0xff]  ;;  %v188_v37 = vld [vmem:[%s1399_s1 + $0x10] sm:$0xff] }
  0x1f   : > { %487 = vperm.xlu1 %936, %v207_v10   ;;  %482 = vperm.xlu0 %935, %v206_v11   ;;  %v195_v36 = vld [vmem:[%s1399_s1 + $0x48] sm:$0xff]  ;;  %v196_v38 = vld [vmem:[%s1399_s1 + $0x50] sm:$0xff]  ;;  %v189_v39 = vld [vmem:[%s1399_s1 + $0x18] sm:$0xff] }
  0x20   : > { %v197_v40 = vld [vmem:[%s1399_s1 + $0x58] sm:$0xff]  ;;  %v190_v41 = vld [vmem:[%s1399_s1 + $0x20] sm:$0xff]  ;;  %v191_v43 = vld [vmem:[%s1399_s1 + $0x28] sm:$0xff] }
  0x21   : > { %812 = vmatpush3.xpose.msk.msra.mxu0 %vm218_vm0, %v183_v9  ;;  %881 = vmatpush3.xpose.msk.msra.mxu1 %vm218_vm0, %v183_v9  ;;  %v198_v42 = vld [vmem:[%s1399_s1 + $0x60] sm:$0xff]  ;;  %v199_v44 = vld [vmem:[%s1399_s1 + $0x68] sm:$0xff]  ;;  %v192_v45 = vld [vmem:[%s1399_s1 + $0x30] sm:$0xff] }
  0x22   : > { %813 = vmatprep.subr.msk.mxu0 %vm218_vm0, %v182_v12  ;;  %866 = vmatprep.subr.msk.mxu1 %vm218_vm0, %v182_v12  ;;  %v200_v46 = vld [vmem:[%s1399_s1 + $0x70] sm:$0xff]  ;;  %v193_v47 = vld [vmem:[%s1399_s1 + $0x38] sm:$0xff] }
  0x23   : > { %497 = vperm.xlu1 %936, %v209_v13   ;;  %492 = vperm.xlu0 %935, %v208_v14   ;;  %v201_v48 = vld [vmem:[%s1399_s1 + $0x78] sm:$0xff] }
  0x25   : > { %814 = vmatpush3.xpose.msk.msra.mxu0 %vm218_vm0, %v182_v12  ;;  %882 = vmatpush3.xpose.msk.msra.mxu1 %vm218_vm0, %v182_v12 }
  0x26   : > { %815 = vmatprep.subr.msk.mxu0 %vm218_vm0, %v181_v15  ;;  %867 = vmatprep.subr.msk.mxu1 %vm218_vm0, %v181_v15 }
  0x27   : > { %507 = vperm.xlu1 %936, %v211_v16   ;;  %502 = vperm.xlu0 %935, %v210_v17  }
  0x29   : > { %816 = vmatpush3.xpose.msk.msra.mxu0 %vm218_vm0, %v181_v15  ;;  %883 = vmatpush3.xpose.msk.msra.mxu1 %vm218_vm0, %v181_v15 }
  0x2a   : > { %817 = vmatprep.subr.msk.mxu0 %vm218_vm0, %v180_v18  ;;  %868 = vmatprep.subr.msk.mxu1 %vm218_vm0, %v180_v18 }
  0x2b   : > { %517 = vperm.xlu1 %936, %v213_v19   ;;  %512 = vperm.xlu0 %935, %v212_v20  }
  0x2d   : > { %818 = vmatpush3.xpose.msk.msra.mxu0 %vm218_vm0, %v180_v18  ;;  %884 = vmatpush3.xpose.msk.msra.mxu1 %vm218_vm0, %v180_v18 }
  0x2e   : > { %819 = vmatprep.subr.msk.mxu0 %vm218_vm0, %v179_v21  ;;  %869 = vmatprep.subr.msk.mxu1 %vm218_vm0, %v179_v21 }
  0x2f   : > { %527 = vperm.xlu1 %936, %v215_v22   ;;  %522 = vperm.xlu0 %935, %v214_v23  }
  0x31   : > { %820 = vmatpush3.xpose.msk.msra.mxu0 %vm218_vm0, %v179_v21  ;;  %885 = vmatpush3.xpose.msk.msra.mxu1 %vm218_vm0, %v179_v21 }
  0x32   : > { %821 = vmatprep.subr.msk.mxu0 %vm218_vm0, %v178_v24  ;;  %870 = vmatprep.subr.msk.mxu1 %vm218_vm0, %v178_v24 }
  0x33   : > { %537 = vperm.xlu1 %936, %v217_v25   ;;  %532 = vperm.xlu0 %935, %v216_v26  }
  0x35   : > { %822 = vmatpush3.xpose.msk.msra.mxu0 %vm218_vm0, %v178_v24  ;;  %886 = vmatpush3.xpose.msk.msra.mxu1 %vm218_vm0, %v178_v24 }
  0x36   : > { %823 = vmatprep.subr.msk.mxu0 %vm218_vm0, %v177_v27  ;;  %871 = vmatprep.subr.msk.mxu1 %vm218_vm0, %v177_v27 }
  0x39   : > { %824 = vmatpush3.xpose.msk.msra.mxu0 %vm218_vm0, %v177_v27  ;;  %887 = vmatpush3.xpose.msk.msra.mxu1 %vm218_vm0, %v177_v27 }
  0x3a   : > { %825 = vmatprep.subr.msk.mxu0 %vm218_vm0, %v176_v28  ;;  %872 = vmatprep.subr.msk.mxu1 %vm218_vm0, %v176_v28 }
  0x3d   : > { %826 = vmatpush3.xpose.msk.msra.mxu0 %vm218_vm0, %v176_v28  ;;  %888 = vmatpush3.xpose.msk.msra.mxu1 %vm218_vm0, %v176_v28 }
  0x3e   : > { %827 = vmatprep.subr.msk.mxu0 %vm218_vm0, %v175_v29  ;;  %873 = vmatprep.subr.msk.mxu1 %vm218_vm0, %v175_v29 }
  0x41   : > { %828 = vmatpush3.xpose.msk.msra.mxu0 %vm218_vm0, %v175_v29  ;;  %889 = vmatpush3.xpose.msk.msra.mxu1 %vm218_vm0, %v175_v29 }
  0x42   : > { %829 = vmatprep.subr.msk.mxu0 %vm218_vm0, %v174_v30  ;;  %874 = vmatprep.subr.msk.mxu1 %vm218_vm0, %v174_v30 }
  0x45   : > { %830 = vmatpush3.xpose.msk.msra.mxu0 %vm218_vm0, %v174_v30  ;;  %890 = vmatpush3.xpose.msk.msra.mxu1 %vm218_vm0, %v174_v30 }
  0x46   : > { %831 = vmatprep.subr.msk.mxu0 %vm218_vm0, %v173_v31  ;;  %875 = vmatprep.subr.msk.mxu1 %vm218_vm0, %v173_v31 }
  0x49   : > { %832 = vmatpush3.xpose.msk.msra.mxu0 %vm218_vm0, %v173_v31  ;;  %891 = vmatpush3.xpose.msk.msra.mxu1 %vm218_vm0, %v173_v31 }
  0x4a   : > { %833 = vmatprep.subr.msk.mxu0 %vm218_vm0, %v172_v32  ;;  %876 = vmatprep.subr.msk.mxu1 %vm218_vm0, %v172_v32 }
  0x4d   : > { %834 = vmatpush3.xpose.msk.msra.mxu0 %vm218_vm0, %v172_v32  ;;  %892 = vmatpush3.xpose.msk.msra.mxu1 %vm218_vm0, %v172_v32 }
  0x4e   : > { %835 = vmatprep.subr.msk.mxu0 %vm218_vm0, %v171_v33  ;;  %877 = vmatprep.subr.msk.mxu1 %vm218_vm0, %v171_v33 }
  0x51   : > { %836 = vmatpush3.xpose.msk.msra.mxu0 %vm218_vm0, %v171_v33  ;;  %893 = vmatpush3.xpose.msk.msra.mxu1 %vm218_vm0, %v171_v33 }
  0x52   : > { %837 = vmatprep.subr.msk.mxu0 %vm218_vm0, %v170_v34  ;;  %878 = vmatprep.subr.msk.mxu1 %vm218_vm0, %v170_v34 }
  0x55   : > { %838 = vmatpush3.xpose.msk.msra.mxu0 %vm218_vm0, %v170_v34  ;;  %894 = vmatpush3.xpose.msk.msra.mxu1 %vm218_vm0, %v170_v34 }
  0x58   : > { %840 = vmatmul.mubr.msk.f32.vlgmr.msra.gmra.mxu0 %vm218_vm0, %v187_v35  ;;  %852 = vmatmul.mubr.msk.f32.vlgmr.msra.gmra.mxu1 %vm218_vm0, %v195_v36 }
  0x59   : > { %842 = vmatprep.mubr.msk.f32.mxu0 %vm218_vm0, %v188_v37  ;;  %854 = vmatprep.mubr.msk.f32.mxu1 %vm218_vm0, %v196_v38 }
  0x5c   : > { %843 = vmatmul.mubr.msk.f32.gmra.mxu0 %vm218_vm0, %v189_v39  ;;  %855 = vmatmul.mubr.msk.f32.gmra.mxu1 %vm218_vm0, %v197_v40 }
  0x5d   : > { %845 = vmatprep.mubr.msk.f32.mxu0 %vm218_vm0, %v190_v41  ;;  %857 = vmatprep.mubr.msk.f32.mxu1 %vm218_vm0, %v198_v42 }
  0x60   : > { %846 = vmatmul.mubr.msk.f32.gmra.mxu0 %vm218_vm0, %v191_v43  ;;  %858 = vmatmul.mubr.msk.f32.gmra.mxu1 %vm218_vm0, %v199_v44 }
  0x61   : > { %848 = vmatprep.mubr.msk.f32.mxu0 %vm218_vm0, %v192_v45  ;;  %860 = vmatprep.mubr.msk.f32.mxu1 %vm218_vm0, %v200_v46 }
  0x64   : > { %849 = vmatmul.mubr.msk.f32.gmra.mxu0 %vm218_vm0, %v193_v47  ;;  %861 = vmatmul.mubr.msk.f32.gmra.mxu1 %vm218_vm0, %v201_v48  ;;  %v577_v48 = vlaneseq }
  0x91   : > { %v473_v49 = vpop.permute.xlu1 %472  ;;  %v463_v50 = vpop.permute.xlu0 %462 }
  0x96   : > { %v478_v51 = vpop.permute.xlu1 %477  ;;  %v468_v52 = vpop.permute.xlu0 %467 }
  0x9a   : > { %v488_v53 = vpop.permute.xlu1 %487  ;;  %v483_v54 = vpop.permute.xlu0 %482 }
  0x9e   : > { %v498_v55 = vpop.permute.xlu1 %497  ;;  %v493_v56 = vpop.permute.xlu0 %492 }
  0xa2   : > { %v508_v57 = vpop.permute.xlu1 %507  ;;  %v503_v58 = vpop.permute.xlu0 %502 }
  0xa6   : > { %v518_v1 = vpop.permute.xlu1 %517  ;;  %v513_v2 = vpop.permute.xlu0 %512 }
  0xaa   : > { %v528_v10 = vpop.permute.xlu1 %527  ;;  %v523_v11 = vpop.permute.xlu0 %522 }
  0xae   : > { %v538_v35 = vpop.permute.xlu1 %537  ;;  %v533_v36 = vpop.permute.xlu0 %532 }
 0x118   : > { %v841_v59 = vpop.f32.mrf.mxu0  ;;  %v853_v60 = vpop.f32.mrf.mxu1 }
 0x119   : > { %v1269_v12 = vsub.f32 %v468_v52, %v841_v59  ;;  %v1285_v22 = vsub.f32 %v508_v57, %v853_v60 }
 0x11a   : > { %v381_v61 = vpop.f32.mrf.mxu0  ;;  %v421_v62 = vpop.f32.mrf.mxu1 }
 0x11b   : > { %v1271_v13 = vsub.f32 %v463_v50, %v381_v61  ;;  %v1275_v15 = vsub.f32 %v503_v58, %v421_v62 }
 0x11c   : > { %v844_v63 = vpop.f32.mrf.mxu0  ;;  %v856_v0 = vpop.f32.mrf.mxu1 }
 0x11d   : > { %v1277_v18 = vsub.f32 %v478_v51, %v844_v63  ;;  %v1287_v23 = vsub.f32 %v518_v1, %v856_v0  ;;  %v578_v51 = vshrl.u32 %v577_v48, 7 }
 0x11e   : > { %v391_v3 = vpop.f32.mrf.mxu0  ;;  %v431_v4 = vpop.f32.mrf.mxu1 }
 0x11f   : > { %v1289_v25 = vsub.f32 %v473_v49, %v391_v3  ;;  %v1296_v29 = vsub.f32 %v513_v2, %v431_v4  ;;  %v581_v57 = vadd.s32 24, %v578_v51  ;;  %v582_v58 = vadd.s32 32, %v578_v51 }
 0x120   : > { %v847_v5 = vpop.f32.mrf.mxu0  ;;  %v859_v6 = vpop.f32.mrf.mxu1  ;;  %v583_v59 = vadd.s32 40, %v578_v51  ;;  %v584_v60 = vadd.s32 48, %v578_v51  ;;  %v585_v61 = vadd.s32 56, %v578_v51  ;;  %v586_v62 = vadd.s32 64, %v578_v51 }
 0x121   : > { %v1267_v7 = vsub.f32 %v488_v53, %v847_v5  ;;  %v1304_v37 = vsub.f32 %v528_v10, %v859_v6  ;;  %v587_v0 = vadd.s32 72, %v578_v51  ;;  %v588_v1 = vadd.s32 80, %v578_v51 }
 0x122   : > { %v401_v8 = vpop.f32.mrf.mxu0  ;;  %v441_v9 = vpop.f32.mrf.mxu1  ;;  %v589_v2 = vadd.s32 88, %v578_v51  ;;  %v590_v3 = vadd.s32 96, %v578_v51  ;;  %v591_v4 = vadd.s32 104, %v578_v51  ;;  %v592_v5 = vadd.s32 112, %v578_v51 }
 0x123   : > { %v1273_v14 = vsub.f32 %v483_v54, %v401_v8  ;;  %v557_v19 = vmin.f32 %v1269_v12, %v1267_v7  ;;  %v1299_v32 = vsub.f32 %v523_v11, %v441_v9  ;;  %v579_v54 = vadd.s32 8, %v578_v51 }
 0x124   : > { %v850_v16 = vpop.f32.mrf.mxu0  ;;  %v862_v17 = vpop.f32.mrf.mxu1  ;;  %v593_v6 = vadd.s32 120, %v578_v51 }
 0x125   : > { %v556_v20 = vmin.f32 %v1271_v13, %v1273_v14  ;;  %v1283_v21 = vsub.f32 %v498_v55, %v850_v16  ;;  %v561_v31 = vmin.f32 %v557_v19, %v1285_v22  ;;  %v1307_v39 = vsub.f32 %v538_v35, %v862_v17 }
 0x126   : > { %v411_v24 = vpop.f32.mrf.mxu0  ;;  %v451_v30 = vpop.f32.mrf.mxu1 }
 0x127   : > { %v560_v26 = vmin.f32 %v556_v20, %v1275_v15  ;;  %v559_v27 = vmin.f32 %v1277_v18, %v1283_v21  ;;  %v1294_v28 = vsub.f32 %v493_v56, %v411_v24  ;;  %v554_v40 = vsub.f32 %v533_v36, %v451_v30 }
 0x128   : > { %v565_v42 = vmin.f32 %v561_v31, %v1304_v37  ;;  %v580_v56 = vadd.s32 16, %v578_v51 }
 0x129   : > { %v563_v33 = vmin.f32 %v559_v27, %v1287_v23  ;;  %v558_v34 = vmin.f32 %v1289_v25, %v1294_v28  ;;  %v564_v38 = vmin.f32 %v560_v26, %v1299_v32 }
 0x12b   : > { %v562_v41 = vmin.f32 %v558_v34, %v1296_v29  ;;  %v567_v43 = vmin.f32 %v563_v33, %v1307_v39  ;;  %v568_v45 = vmin.f32 %v564_v38, %v565_v42 }
 0x12d   : > { %v566_v44 = vmin.f32 %v562_v41, %v554_v40 }
 0x12f   : > { %v569_v46 = vmin.f32 %v566_v44, %v567_v43 }
 0x131   : > { %v570_v47 = vmin.f32 %v568_v45, %v569_v46 }
 0x133   : > { %v571_v49 = vrot.slane %v570_v47, 4 }
 0x135   : > { %v572_v50 = vmin.f32 %v570_v47, %v571_v49 }
 0x137   : > { %v573_v52 = vrot.slane %v572_v50, 2 }
 0x139   : > { %v574_v53 = vmin.f32 %v572_v50, %v573_v52 }
 0x13b   : > { %v575_v55 = vrot.slane %v574_v53, 1 }
 0x13d   : > { %v576_v63 = vmin.f32 %v574_v53, %v575_v55 }
 0x13f   : > { %vm594_vm1 = vcmp.eq.f32.partialorder %v1271_v13, %v576_v63  ;;  %vm595_vm2 = vcmp.eq.f32.partialorder %v1269_v12, %v576_v63  ;;  %vm596_vm3 = vcmp.eq.f32.partialorder %v1289_v25, %v576_v63  ;;  %vm597_vm4 = vcmp.eq.f32.partialorder %v1277_v18, %v576_v63 }
 0x140   : > { %vm598_vm5 = vcmp.eq.f32.partialorder %v1273_v14, %v576_v63  ;;  %vm599_vm6 = vcmp.eq.f32.partialorder %v1267_v7, %v576_v63  ;;  %vm600_vm7 = vcmp.eq.f32.partialorder %v1294_v28, %v576_v63  ;;  %vm601_vm8 = vcmp.eq.f32.partialorder %v1283_v21, %v576_v63 }
 0x141   : > { %vm602_vm9 = vcmp.eq.f32.partialorder %v1275_v15, %v576_v63  ;;  %vm603_vm10 = vcmp.eq.f32.partialorder %v1285_v22, %v576_v63  ;;  %vm604_vm11 = vcmp.eq.f32.partialorder %v1296_v29, %v576_v63  ;;  %vm605_vm12 = vcmp.eq.f32.partialorder %v1287_v23, %v576_v63 }
 0x142   : > { %vm606_vm13 = vcmp.eq.f32.partialorder %v1299_v32, %v576_v63  ;;  %vm607_vm14 = vcmp.eq.f32.partialorder %v1304_v37, %v576_v63  ;;  %vm608_vm15 = vcmp.eq.f32.partialorder %v554_v40, %v576_v63  ;;  %vm609_vm0 = vcmp.eq.f32.partialorder %v1307_v39, %v576_v63 }
 0x143   : > { %v610_v8 = vsel %vm594_vm1, %v578_v51, 128  ;;  %v611_v9 = vsel %vm595_vm2, %v579_v54, 128  ;;  %v612_v10 = vsel %vm596_vm3, %v580_v56, 128  ;;  %v613_v11 = vsel %vm597_vm4, %v581_v57, 128 }
 0x144   : > { %v614_v16 = vsel %vm598_vm5, %v582_v58, 128  ;;  %v615_v17 = vsel %vm599_vm6, %v583_v59, 128  ;;  %v616_v19 = vsel %vm600_vm7, %v584_v60, 128  ;;  %v617_v13 = vsel %vm601_vm8, %v585_v61, 128 }
 0x145   : > { %v618_v12 = vsel %vm602_vm9, %v586_v62, 128  ;;  %v619_v20 = vsel %vm603_vm10, %v587_v0, 128  ;;  %v620_v18 = vsel %vm604_vm11, %v588_v1, 128  ;;  %v621_v14 = vsel %vm605_vm12, %v589_v2, 128 }
 0x146   : > { %v622_v7 = vsel %vm606_vm13, %v590_v3, 128  ;;  %v623_v24 = vsel %vm607_vm14, %v591_v4, 128  ;;  %v624_v21 = vsel %vm608_vm15, %v592_v5, 128  ;;  %v625_v15 = vsel %vm609_vm0, %v593_v6, 128 }
 0x147   : > { %vm626_vm1 = vcmp.lt.s32.totalorder %v610_v8, %v614_v16  ;;  %vm628_vm2 = vcmp.lt.s32.totalorder %v611_v9, %v615_v17  ;;  %vm630_vm3 = vcmp.lt.s32.totalorder %v612_v10, %v616_v19  ;;  %vm632_vm4 = vcmp.lt.s32.totalorder %v613_v11, %v617_v13 }
 0x148   : > { %v627_v22 = vsel %vm626_vm1, %v610_v8, %v614_v16  ;;  %v629_v25 = vsel %vm628_vm2, %v611_v9, %v615_v17  ;;  %v631_v26 = vsel %vm630_vm3, %v612_v10, %v616_v19  ;;  %v633_v23 = vsel %vm632_vm4, %v613_v11, %v617_v13 }
 0x149   : > { %vm634_vm5 = vcmp.lt.s32.totalorder %v627_v22, %v618_v12  ;;  %vm636_vm6 = vcmp.lt.s32.totalorder %v629_v25, %v619_v20  ;;  %vm638_vm7 = vcmp.lt.s32.totalorder %v631_v26, %v620_v18  ;;  %vm640_vm8 = vcmp.lt.s32.totalorder %v633_v23, %v621_v14 }
 0x14a   : > { %v635_v27 = vsel %vm634_vm5, %v627_v22, %v618_v12  ;;  %v637_v28 = vsel %vm636_vm6, %v629_v25, %v619_v20  ;;  %v639_v29 = vsel %vm638_vm7, %v631_v26, %v620_v18  ;;  %v641_v30 = vsel %vm640_vm8, %v633_v23, %v621_v14 }
 0x14b   : > { %vm642_vm9 = vcmp.lt.s32.totalorder %v635_v27, %v622_v7  ;;  %vm644_vm10 = vcmp.lt.s32.totalorder %v637_v28, %v623_v24  ;;  %vm646_vm11 = vcmp.lt.s32.totalorder %v639_v29, %v624_v21  ;;  %vm648_vm12 = vcmp.lt.s32.totalorder %v641_v30, %v625_v15 }
 0x14c   : > { %v643_v31 = vsel %vm642_vm9, %v635_v27, %v622_v7  ;;  %v645_v32 = vsel %vm644_vm10, %v637_v28, %v623_v24  ;;  %v647_v33 = vsel %vm646_vm11, %v639_v29, %v624_v21  ;;  %v649_v34 = vsel %vm648_vm12, %v641_v30, %v625_v15 }
 0x14d   : > { %vm650_vm13 = vcmp.lt.s32.totalorder %v643_v31, %v645_v32  ;;  %vm652_vm14 = vcmp.lt.s32.totalorder %v647_v33, %v649_v34 }
 0x14e   : > { %v651_v35 = vsel %vm650_vm13, %v643_v31, %v645_v32  ;;  %v653_v36 = vsel %vm652_vm14, %v647_v33, %v649_v34 }
 0x14f   : > { %vm654_vm15 = vcmp.lt.s32.totalorder %v651_v35, %v653_v36 }
 0x150   : > { %v655_v37 = vsel %vm654_vm15, %v651_v35, %v653_v36 }
 0x151   : > { %v656_v38 = vrot.slane %v655_v37, 4 }
 0x153   : > { %vm657_vm0 = vcmp.lt.s32.totalorder %v655_v37, %v656_v38 }
 0x154   : > { %v658_v39 = vsel %vm657_vm0, %v655_v37, %v656_v38 }
 0x155   : > { %v659_v40 = vrot.slane %v658_v39, 2 }
 0x157   : > { %vm660_vm1 = vcmp.lt.s32.totalorder %v658_v39, %v659_v40 }
 0x158   : > { %v661_v41 = vsel %vm660_vm1, %v658_v39, %v659_v40 }
 0x159   : > { %v662_v42 = vrot.slane %v661_v41, 1 }
 0x15b   : > { %vm663_vm2 = vcmp.lt.s32.totalorder %v661_v41, %v662_v42 }
 0x15c   : > { %v664_v43 = vsel %vm663_vm2, %v661_v41, %v662_v42 }
 0x15d   : > { %665 = vst [vmem:[%s163_s20] sm:$0x1] %v664_v43 }
 0x15e   : > { %950 = shalt.err (!%p947_p3)
}
 0x15f   : > { %s951_s24 = scalar_lea.hbm %s1363_s28, 16  ;;  %s955_s8 = scalar_lea.hbm %s1401_s3, 64 }
 0x160   : > { %p952_p4 = scmp.ne.s32.totalorder %s1363_s28, %s951_s24  ;;  %p956_p9 = scmp.lt.s32.totalorder %s1363_s28, %s1401_s3 }
 0x161   : > { %p957_p10 = scmp.lt.s32.totalorder %s955_s8, %s951_s24 }
 0x162   : > { %p953_p7 = pnand %p952_p4, %p1056_p5 }
 0x163   : > { %p958_p11 = por %p957_p10, %p956_p9 }
 0x164   : > { %p954_p8 = pneg %p953_p7 }
 0x166   : > { %p959_p12 = pnand %p958_p11, %p954_p8 }
 0x168   : > { %962 = shalt.err (!%p959_p12)
}
 0x169   : > { %895 = dma.vmem_to_hbm [thread:$0]  (%p1056_p5), %s680_s25, 16, %s1363_s28, %s667_s29  }
 0x16a PF: > { %p901_p13 = scmp.ge.s32.totalorder %s997_s15, 2  ;;  %s691_s16 = sand.u32 1, %s985_s12  }
 0x16b   : > { %s692_s17 = scalar_lea.sflag [#allocation3], %s691_s16 }
 0x16c   : > { %p898_p0 = pnand %p901_p13, %p1060_p6 }
 0x16e   : > { %p899_p1 = pneg %p898_p0 }
 0x170   : > { %980 = dma.done.wait (%p899_p1), %s692_s17, 16  }
 0x171   : > { %982 = vsyncadd (%p899_p1), %s692_s17, 4294967280  ;;  %p13_p2 = scmp.ge.s32.totalorder %s1044_s18, 6   ;;  %s1404_s12 = smov %s989_s13 }
 0x172   : > { %s1405_s13 = smov %s993_s14  ;;  %s1406_s14 = smov %s1054_s21 }
 0x173   : > { %s1407_s15 = smov %s1044_s18  ;;  %15 = sbr.rel (!%p13_p2) target bundleno = 3 (0x3), region = 67 }
 0x178   :  { %696 = vsyncpa [#allocation3], 1 }
 0x179   :  { %698 = vsyncpa [#allocation3 + $0x1], 1 }

</bundles_post_ra>
